<compile_context>
chip_gen: v7x
topology: tpu7x:2x2x1
jax: 0.10.0
libtpu: 0.0.40
codegen_flags: <defaults>
</compile_context>

<pallas_src>
import functools

import jax
import jax.numpy as jnp
from jax.experimental import pallas as pl
from jax.experimental.pallas import tpu as pltpu

_VMEM = pl.BlockSpec(memory_space=pltpu.MemorySpace.VMEM)
_VMEM_LIMIT = 48 * 1024 * 1024   # explicit scoped-VMEM budget (< v7x 64 MiB physical)
_LN_EPS = 1e-12


def _pick_tile(dim, target, align):
    """Largest tile <= target that divides `dim` and is a multiple of `align`.
    Falls back to the full dim (block == array extent is always legal)."""
    if dim <= target:
        return dim
    t = (target // align) * align
    while t >= align:
        if dim % t == 0:
            return t
        t -= align
    return dim


# --------------------------------------------------------------------------
# Tiled dense:  y = x @ w + b   (f32 accumulation, K axis is the reduction)
# --------------------------------------------------------------------------
def _dense_kernel(x_ref, w_ref, b_ref, o_ref, acc_ref):
    @pl.when(pl.program_id(2) == 0)
    def _():
        acc_ref[...] = jnp.zeros_like(acc_ref)

    acc_ref[...] += jnp.dot(x_ref[...], w_ref[...],
                            preferred_element_type=jnp.float32)

    @pl.when(pl.program_id(2) == pl.num_programs(2) - 1)
    def _():
        o_ref[...] = (acc_ref[...] + b_ref[...]).astype(o_ref.dtype)


def dense(x, w, b, out_dtype=None, tm=512, tn=768, tk=1536):
    """x:[M,K], w:[K,N], b:[N] -> x@w+b with f32 accumulation."""
    M, K = x.shape
    N = w.shape[1]
    out_dtype = out_dtype or x.dtype
    tm = _pick_tile(M, tm, 16)      # bf16 sublane packing
    tn = _pick_tile(N, tn, 256)     # v6e/v7x 256-wide MXU alignment
    tk = _pick_tile(K, tk, 256)
    nm, nn, nk = M // tm, N // tn, K // tk
    return pl.pallas_call(
        _dense_kernel,
        out_shape=jax.ShapeDtypeStruct((M, N), out_dtype),
        grid=(nm, nn, nk),
        in_specs=[
            pl.BlockSpec((tm, tk), lambda i, j, k: (i, k)),
            pl.BlockSpec((tk, tn), lambda i, j, k: (k, j)),   # weight: no M dependence
            pl.BlockSpec((1, tn), lambda i, j, k: (0, j)),
        ],
        out_specs=pl.BlockSpec((tm, tn), lambda i, j, k: (i, j)),
        scratch_shapes=[pltpu.VMEM((tm, tn), jnp.float32)],
        compiler_params=pltpu.CompilerParams(
            dimension_semantics=("parallel", "parallel", "arbitrary"),
            vmem_limit_bytes=_VMEM_LIMIT),
    )(x, w, b.reshape(1, N).astype(jnp.float32))


# --------------------------------------------------------------------------
# Fused dense + residual add + LayerNorm:  y = LN(x @ w + b + res)
# (N = full hidden width so the normalization runs in the K-finalize step)
# --------------------------------------------------------------------------
def _dense_add_ln_kernel(x_ref, w_ref, b_ref, r_ref, g_ref, beta_ref,
                         o_ref, acc_ref, *, eps):
    @pl.when(pl.program_id(1) == 0)
    def _():
        acc_ref[...] = jnp.zeros_like(acc_ref)

    acc_ref[...] += jnp.dot(x_ref[...], w_ref[...],
                            preferred_element_type=jnp.float32)

    @pl.when(pl.program_id(1) == pl.num_programs(1) - 1)
    def _():
        y = acc_ref[...] + b_ref[...] + r_ref[...].astype(jnp.float32)
        mean = jnp.mean(y, axis=-1, keepdims=True)
        c = y - mean
        var = jnp.mean(c * c, axis=-1, keepdims=True)
        o_ref[...] = (c * jax.lax.rsqrt(var + eps) * g_ref[...]
                      + beta_ref[...]).astype(o_ref.dtype)


def dense_add_ln(x, w, b, res, g, beta, out_dtype=jnp.bfloat16,
                 eps=_LN_EPS, tm=512, tk=1536):
    M, K = x.shape
    N = w.shape[1]
    tm = _pick_tile(M, tm, 16)
    tk = _pick_tile(K, tk, 256)
    nm, nk = M // tm, K // tk
    return pl.pallas_call(
        functools.partial(_dense_add_ln_kernel, eps=eps),
        out_shape=jax.ShapeDtypeStruct((M, N), out_dtype),
        grid=(nm, nk),
        in_specs=[
            pl.BlockSpec((tm, tk), lambda i, k: (i, k)),
            pl.BlockSpec((tk, N), lambda i, k: (k, 0)),
            pl.BlockSpec((1, N), lambda i, k: (0, 0)),
            pl.BlockSpec((tm, N), lambda i, k: (i, 0)),
            pl.BlockSpec((1, N), lambda i, k: (0, 0)),
            pl.BlockSpec((1, N), lambda i, k: (0, 0)),
        ],
        out_specs=pl.BlockSpec((tm, N), lambda i, k: (i, 0)),
        scratch_shapes=[pltpu.VMEM((tm, N), jnp.float32)],
        compiler_params=pltpu.CompilerParams(
            dimension_semantics=("parallel", "arbitrary"),
            vmem_limit_bytes=_VMEM_LIMIT),
    )(x, w, b.reshape(1, N).astype(jnp.float32), res,
      g.reshape(1, N).astype(jnp.float32), beta.reshape(1, N).astype(jnp.float32))


# --------------------------------------------------------------------------
# Fused FFN:  y = LN(gelu(x @ wi + bi) @ wf + bf + x)
# The [tm, inter] activation slab lives only in VMEM (grid over inter chunks).
# --------------------------------------------------------------------------
def _ffn_ln_kernel(x_ref, wi_ref, bi_ref, wf_ref, bf_ref, g_ref, beta_ref,
                   o_ref, acc_ref, *, eps):
    j = pl.program_id(1)

    @pl.when(j == 0)
    def _():
        acc_ref[...] = jnp.zeros_like(acc_ref)

    a = jnp.dot(x_ref[...], wi_ref[...],
                preferred_element_type=jnp.float32) + bi_ref[...]
    # TODO(synk): BERT uses exact erf-GELU; tanh-approx GELU used here.
    a = jax.nn.gelu(a, approximate=True)
    acc_ref[...] += jnp.dot(a.astype(x_ref.dtype), wf_ref[...],
                            preferred_element_type=jnp.float32)

    @pl.when(j == pl.num_programs(1) - 1)
    def _():
        y = acc_ref[...] + bf_ref[...] + x_ref[...].astype(jnp.float32)
        mean = jnp.mean(y, axis=-1, keepdims=True)
        c = y - mean
        var = jnp.mean(c * c, axis=-1, keepdims=True)
        o_ref[...] = (c * jax.lax.rsqrt(var + eps) * g_ref[...]
                      + beta_ref[...]).astype(o_ref.dtype)


def ffn_ln(x, wi, bi, wf, bf, g, beta, out_dtype=jnp.bfloat16, eps=_LN_EPS,
           tm=512, tj=768):
    M, H = x.shape
    I = wi.shape[1]
    tm = _pick_tile(M, tm, 16)
    tj = _pick_tile(I, tj, 256)
    nm, nj = M // tm, I // tj
    return pl.pallas_call(
        functools.partial(_ffn_ln_kernel, eps=eps),
        out_shape=jax.ShapeDtypeStruct((M, H), out_dtype),
        grid=(nm, nj),
        in_specs=[
            pl.BlockSpec((tm, H), lambda i, j: (i, 0)),    # x (also the residual)
            pl.BlockSpec((H, tj), lambda i, j: (0, j)),
            pl.BlockSpec((1, tj), lambda i, j: (0, j)),
            pl.BlockSpec((tj, H), lambda i, j: (j, 0)),
            pl.BlockSpec((1, H), lambda i, j: (0, 0)),
            pl.BlockSpec((1, H), lambda i, j: (0, 0)),
            pl.BlockSpec((1, H), lambda i, j: (0, 0)),
        ],
        out_specs=pl.BlockSpec((tm, H), lambda i, j: (i, 0)),
        scratch_shapes=[pltpu.VMEM((tm, H), jnp.float32)],
        compiler_params=pltpu.CompilerParams(
            dimension_semantics=("parallel", "arbitrary"),
            vmem_limit_bytes=_VMEM_LIMIT),
    )(x, wi, bi.reshape(1, I).astype(jnp.float32), wf,
      bf.reshape(1, H).astype(jnp.float32),
      g.reshape(1, H).astype(jnp.float32), beta.reshape(1, H).astype(jnp.float32))


# --------------------------------------------------------------------------
# Standalone LayerNorm (embeddings)
# --------------------------------------------------------------------------
def _ln_kernel(x_ref, g_ref, b_ref, o_ref, *, eps):
    x = x_ref[...].astype(jnp.float32)
    mean = jnp.mean(x, axis=-1, keepdims=True)
    c = x - mean
    var = jnp.mean(c * c, axis=-1, keepdims=True)
    o_ref[...] = (c * jax.lax.rsqrt(var + eps) * g_ref[...]
                  + b_ref[...]).astype(o_ref.dtype)


def layernorm(x, g, b, out_dtype=None, eps=_LN_EPS, tm=1024):
    M, H = x.shape
    out_dtype = out_dtype or x.dtype
    tm = _pick_tile(M, tm, 16)
    nm = M // tm
    return pl.pallas_call(
        functools.partial(_ln_kernel, eps=eps),
        out_shape=jax.ShapeDtypeStruct((M, H), out_dtype),
        grid=(nm,),
        in_specs=[pl.BlockSpec((tm, H), lambda i: (i, 0)),
                  pl.BlockSpec((1, H), lambda i: (0, 0)),
                  pl.BlockSpec((1, H), lambda i: (0, 0))],
        out_specs=pl.BlockSpec((tm, H), lambda i: (i, 0)),
        compiler_params=pltpu.CompilerParams(dimension_semantics=("parallel",)),
    )(x, g.reshape(1, H).astype(jnp.float32), b.reshape(1, H).astype(jnp.float32))


# --------------------------------------------------------------------------
# Attention, gridded over (batch, head_group).  The fused QKV projection output
# [B, S, 3, H] is sliced per head group by BlockSpec, and the context is written
# straight into a [B, S, H] token-major slab (no XLA-level head transposes).
# --------------------------------------------------------------------------
def _head_group(n_heads, head_dim):
    """Smallest divisor of n_heads whose width (hg*d) is a 128-lane multiple;
    falls back to all heads (block width == full hidden size)."""
    for hg in range(1, n_heads + 1):
        if n_heads % hg == 0 and (hg * head_dim) % 128 == 0:
            return hg
    return n_heads


def _attention_kernel(qkv_ref, bias_ref, o_ref, *, hg, d, scale):
    bias = bias_ref[0]                                   # [1, S] additive mask bias
    k_all = qkv_ref[0, :, 1, :]                          # [S, hg*d]  bf16
    v_all = qkv_ref[0, :, 2, :]
    # fold the 1/sqrt(d) scale into q (S*hg*d elems, not S*S scores)
    q_all = (qkv_ref[0, :, 0, :].astype(jnp.float32) * scale).astype(k_all.dtype)
    for h in range(hg):                                  # static, tiny loop (1-2 heads)
        sl = slice(h * d, (h + 1) * d)
        q = q_all[:, sl]
        k = k_all[:, sl]
        v = v_all[:, sl]
        # QK^T via dot_general contracting last dims (no explicit k.T -> no XLU pass)
        s = jax.lax.dot_general(q, k, (((1,), (1,)), ((), ())),
                                preferred_element_type=jnp.float32)   # [S, S]
        s = s + bias
        s = s - jnp.max(s, axis=-1, keepdims=True)
        p = jnp.exp(s)
        p = p * pl.reciprocal(jnp.sum(p, axis=-1, keepdims=True), approx=True)
        ctx = jnp.dot(p.astype(v.dtype), v,
                      preferred_element_type=jnp.float32)             # [S, d]
        o_ref[0, :, sl] = ctx.astype(o_ref.dtype)
    # TODO(synk): switch to online-softmax (flash) KV tiling for long sequences.


def attention(qkv, attn_bias, *, num_heads, scale):
    """qkv: [B, S, 3, H] (free reshape of fused QKV projection, bf16);
    attn_bias: [B, 1, S] additive f32 mask bias.  Returns ctx [B, S, H]."""
    B, S, _, H = qkv.shape
    d = H // num_heads
    hg = _head_group(num_heads, d)
    ng = num_heads // hg
    return pl.pallas_call(
        functools.partial(_attention_kernel, hg=hg, d=d, scale=scale),
        out_shape=jax.ShapeDtypeStruct((B, S, H), qkv.dtype),
        grid=(B, ng),
        in_specs=[pl.BlockSpec((1, S, 3, hg * d), lambda b, g: (b, 0, 0, g)),
                  pl.BlockSpec((1, 1, S), lambda b, g: (b, 0, 0))],
        out_specs=pl.BlockSpec((1, S, hg * d), lambda b, g: (b, 0, g)),
        compiler_params=pltpu.CompilerParams(
            dimension_semantics=("parallel", "parallel"),
            vmem_limit_bytes=_VMEM_LIMIT),
    )(qkv, attn_bias)


# --------------------------------------------------------------------------
# Span head: trig = left + right ;  out = trig @ fc_w_pad + fc_b_pad
# (classifier width padded to 128 lanes; sliced back outside)
# --------------------------------------------------------------------------
def _span_fc_kernel(a_ref, b_ref, w_ref, bias_ref, trig_ref, out_ref):
    t = a_ref[...].astype(jnp.float32) + b_ref[...].astype(jnp.float32)
    trig_ref[...] = t
    out_ref[...] = jnp.dot(t, w_ref[...],
                           preferred_element_type=jnp.float32) + bias_ref[...]


def span_classify(a, b, w_pad, bias_pad):
    N, H = a.shape
    CP = w_pad.shape[1]
    return pl.pallas_call(
        _span_fc_kernel,
        out_shape=(jax.ShapeDtypeStruct((N, H), jnp.float32),
                   jax.ShapeDtypeStruct((N, CP), jnp.float32)),
        in_specs=[_VMEM, _VMEM, _VMEM, _VMEM],
        out_specs=(_VMEM, _VMEM),
    )(a, b, w_pad, bias_pad.reshape(1, CP))


# --------------------------------------------------------------------------
# Synthetic BERT-ED parameters + forward
# --------------------------------------------------------------------------
def init_params(key, *, vocab, max_pos, type_vocab, hidden, heads, inter,
                layers, classes):
    keys = iter(jax.random.split(key, 16 + 16 * layers))

    def w(shape, dtype=jnp.bfloat16):
        return (0.02 * jax.random.normal(next(keys), shape,
                                         dtype=jnp.float32)).astype(dtype)

    zeros = lambda *s: jnp.zeros(s, jnp.float32)
    ones = lambda *s: jnp.ones(s, jnp.float32)

    c_pad = ((classes + 127) // 128) * 128
    fc_w = 0.02 * jax.random.normal(next(keys), (hidden, classes), dtype=jnp.float32)

    params = dict(
        num_heads=heads, num_classes=classes,
        word_emb=w((vocab, hidden), jnp.float32),
        pos_emb=w((max_pos, hidden), jnp.float32),
        type_emb=w((type_vocab, hidden), jnp.float32),
        emb_ln_g=ones(hidden), emb_ln_b=zeros(hidden),
        fc_w_pad=jnp.zeros((hidden, c_pad), jnp.float32).at[:, :classes].set(fc_w),
        fc_b_pad=jnp.zeros((c_pad,), jnp.float32),
        layers=[],
    )
    for _ in range(layers):
        wq, wk, wv = w((hidden, hidden)), w((hidden, hidden)), w((hidden, hidden))
        params["layers"].append(dict(
            wqkv=jnp.concatenate([wq, wk, wv], axis=1),        # fused QKV weight
            bqkv=zeros(3 * hidden),
            wo=w((hidden, hidden)), bo=zeros(hidden),
            ln1_g=ones(hidden), ln1_b=zeros(hidden),
            wi=w((hidden, inter)), bi=zeros(inter),
            wf=w((inter, hidden)), bf=zeros(hidden),
            ln2_g=ones(hidden), ln2_b=zeros(hidden),
        ))
    return params


def bert_ed_forward(params, x_ids, masks, span=None, aug=None, aug_key=None):
    """Mirrors BertED.forward (is_input_mapping=False path)."""
    if span is None:
        raise ValueError("span must be provided (matches the PyTorch module's usage)")

    B, S = x_ids.shape
    H = params["word_emb"].shape[1]
    nH = params["num_heads"]
    d = H // nH
    C = params["num_classes"]
    masks_f = masks.astype(jnp.float32)

    # ---- backbone (synthetic BERT encoder) ----
    h = (params["word_emb"][x_ids]
         + params["pos_emb"][jnp.arange(S)][None, :, :]
         + params["type_emb"][0][None, None, :])
    h2 = layernorm(h.reshape(B * S, H), params["emb_ln_g"], params["emb_ln_b"],
                   out_dtype=jnp.bfloat16)

    # additive attention mask bias, computed once (no per-head repeat)
    attn_bias = ((masks_f - 1.0) * 1e9).reshape(B, 1, S)
    scale = 1.0 / (d ** 0.5)

    for lyr in params["layers"]:
        qkv = dense(h2, lyr["wqkv"], lyr["bqkv"])               # [B*S, 3H] fused QKV
        ctx = attention(qkv.reshape(B, S, 3, H), attn_bias,     # free reshape, no split
                        num_heads=nH, scale=scale)              # [B, S, H]
        # output projection + residual + LN fused
        h2 = dense_add_ln(ctx.reshape(B * S, H), lyr["wo"], lyr["bo"],
                          h2, lyr["ln1_g"], lyr["ln1_b"])
        # FFN up + GELU + down + residual + LN fused (inter slab stays in VMEM)
        h2 = ffn_ln(h2, lyr["wi"], lyr["bi"], lyr["wf"], lyr["bf"],
                    lyr["ln2_g"], lyr["ln2_b"])

    x = h2.reshape(B, S, H)                                     # last_hidden_state
    # backbone_output[1] (pooled output) is never used by BertED.forward -> skipped.

    # ---- BertED head ----
    return_dict = {}
    context_feature = h2                                        # x.view(-1, hidden)
    return_dict["reps"] = x[:, 0, :]                            # CLS reps

    # span gather: one fused gather over the flattened token axis
    offs = (jnp.arange(B, dtype=span.dtype) * S)[:, None]
    left_idx = (span[:, :, 0] + offs).reshape(-1)
    right_idx = (span[:, :, 1] + offs).reshape(-1)
    a = jnp.take(h2, left_idx, axis=0)
    bb = jnp.take(h2, right_idx, axis=0)

    trig_feature, out_pad = span_classify(a, bb, params["fc_w_pad"], params["fc_b_pad"])
    outputs = out_pad[:, :C]

    return_dict["outputs"] = outputs
    return_dict["context_feat"] = context_feature
    return_dict["trig_feat"] = trig_feature

    if aug is not None:
        # torch.randn_like -> explicit JAX key (deterministic stand-in)
        noise = jax.random.normal(aug_key, trig_feature.shape, dtype=trig_feature.dtype)
        feature_aug = trig_feature + noise * aug
        outputs_aug = dense(feature_aug, params["fc_w_pad"], params["fc_b_pad"],
                            out_dtype=jnp.float32)[:, :C]
        return_dict["feature_aug"] = feature_aug
        return_dict["outputs_aug"] = outputs_aug

    return return_dict


# --------------------------------------------------------------------------
if __name__ == "__main__":
    B, S = 2, 16                 # batch, sequence length
    HIDDEN, HEADS, INTER, LAYERS = 32, 2, 64, 2
    VOCAB, MAX_POS, TYPE_VOCAB = 50, 32, 2
    CLASS_NUM = 4 + 1            # args.class_num + 1
    P = 3                        # spans per batch element

    key = jax.random.PRNGKey(0)
    pkey, xkey, skey, akey = jax.random.split(key, 4)

    params = init_params(pkey, vocab=VOCAB, max_pos=MAX_POS, type_vocab=TYPE_VOCAB,
                         hidden=HIDDEN, heads=HEADS, inter=INTER,
                         layers=LAYERS, classes=CLASS_NUM)

    x_ids = jax.random.randint(xkey, (B, S), 0, VOCAB, dtype=jnp.int32)
    masks = jnp.ones((B, S), jnp.float32).at[1, S - 4:].set(0.0)   # pad tail of sample 1
    span = jax.random.randint(skey, (B, P, 2), 0, S, dtype=jnp.int32)

    out = bert_ed_forward(params, x_ids, masks, span=span, aug=0.1, aug_key=akey)
    jax.block_until_ready(out)

    assert out["reps"].shape == (B, HIDDEN)
    assert out["context_feat"].shape == (B * S, HIDDEN)
    assert out["trig_feat"].shape == (B * P, HIDDEN)
    assert out["outputs"].shape == (B * P, CLASS_NUM)
    assert out["outputs_aug"].shape == (B * P, CLASS_NUM)
    print("KERNEL_OK")
</pallas_src>

<mosaic_0001>
module attributes {stable_mosaic.version = 11 : i64} {
  func.func @_ln_kernel(%arg0: i32, %arg1: memref<32x32xf32, #tpu.memory_space<vmem>>, %arg2: memref<1x32xf32, #tpu.memory_space<vmem>>, %arg3: memref<1x32xf32, #tpu.memory_space<vmem>>, %arg4: memref<32x32xbf16, #tpu.memory_space<vmem>>) attributes {dimension_semantics = [#tpu.dimension_semantics<parallel>], iteration_bounds = array<i64: 1>, scalar_prefetch = 0 : i64, scratch_operands = 0 : i64, tpu.core_type = #tpu.core_type<tc>, window_params = [{transform_indices = @transform_0, window_bounds = array<i64: 32, 32>}, {pipeline_mode = #tpu.pipeline_mode<synchronous>, transform_indices = @transform_1, window_bounds = array<i64: 1, 32>}, {pipeline_mode = #tpu.pipeline_mode<synchronous>, transform_indices = @transform_2, window_bounds = array<i64: 1, 32>}, {transform_indices = @transform_3, window_bounds = array<i64: 32, 32>}]} {
    %c0 = arith.constant 0 : index
    %c0_0 = arith.constant 0 : index
    %0 = vector.load %arg1[%c0, %c0_0] : memref<32x32xf32, #tpu.memory_space<vmem>>, vector<32x32xf32>
    %cst = arith.constant dense<0.000000e+00> : vector<32xf32>
    %1 = vector.multi_reduction <add>, %0, %cst [1] : vector<32x32xf32> to vector<32xf32>
    %2 = vector.shape_cast %1 : vector<32xf32> to vector<32x1xf32>
    %cst_1 = arith.constant 3.200000e+01 : f32
    %3 = vector.broadcast %cst_1 : f32 to vector<32x1xf32>
    %4 = arith.divf %2, %3 : vector<32x1xf32>
    %5 = vector.broadcast %4 : vector<32x1xf32> to vector<32x32xf32>
    %6 = arith.subf %0, %5 : vector<32x32xf32>
    %7 = arith.mulf %6, %6 : vector<32x32xf32>
    %cst_2 = arith.constant dense<0.000000e+00> : vector<32xf32>
    %8 = vector.multi_reduction <add>, %7, %cst_2 [1] : vector<32x32xf32> to vector<32xf32>
    %9 = vector.shape_cast %8 : vector<32xf32> to vector<32x1xf32>
    %cst_3 = arith.constant 3.200000e+01 : f32
    %10 = vector.broadcast %cst_3 : f32 to vector<32x1xf32>
    %11 = arith.divf %9, %10 : vector<32x1xf32>
    %cst_4 = arith.constant 9.99999996E-13 : f32
    %12 = vector.broadcast %cst_4 : f32 to vector<32x1xf32>
    %13 = arith.addf %11, %12 : vector<32x1xf32>
    %14 = math.rsqrt %13 : vector<32x1xf32>
    %15 = vector.broadcast %14 : vector<32x1xf32> to vector<32x32xf32>
    %16 = arith.mulf %6, %15 : vector<32x32xf32>
    %c0_5 = arith.constant 0 : index
    %c0_6 = arith.constant 0 : index
    %17 = vector.load %arg2[%c0_5, %c0_6] : memref<1x32xf32, #tpu.memory_space<vmem>>, vector<1x32xf32>
    %18 = vector.broadcast %17 : vector<1x32xf32> to vector<32x32xf32>
    %19 = arith.mulf %16, %18 : vector<32x32xf32>
    %c0_7 = arith.constant 0 : index
    %c0_8 = arith.constant 0 : index
    %20 = vector.load %arg3[%c0_7, %c0_8] : memref<1x32xf32, #tpu.memory_space<vmem>>, vector<1x32xf32>
    %21 = vector.broadcast %20 : vector<1x32xf32> to vector<32x32xf32>
    %22 = arith.addf %19, %21 : vector<32x32xf32>
    %23 = arith.truncf %22 : vector<32x32xf32> to vector<32x32xbf16>
    %c0_9 = arith.constant 0 : index
    %c0_10 = arith.constant 0 : index
    %24 = vector.load %arg4[%c0_9, %c0_10] : memref<32x32xbf16, #tpu.memory_space<vmem>>, vector<32x32xbf16>
    tpu.vector_store %arg4[%c0_9, %c0_10], %23 {strides = array<i32>} : memref<32x32xbf16, #tpu.memory_space<vmem>>, vector<32x32xbf16>,
    return
  }
  func.func @transform_0(%arg0: i32) -> (i32, i32) {
    %c0_i32 = arith.constant 0 : i32
    %c0_i32_0 = arith.constant 0 : i32
    return %arg0, %c0_i32 : i32, i32
  }
  func.func @transform_1(%arg0: i32) -> (i32, i32) {
    %c0_i32 = arith.constant 0 : i32
    %c0_i32_0 = arith.constant 0 : i32
    %c0_i32_1 = arith.constant 0 : i32
    return %c0_i32, %c0_i32_0 : i32, i32
  }
  func.func @transform_2(%arg0: i32) -> (i32, i32) {
    %c0_i32 = arith.constant 0 : i32
    %c0_i32_0 = arith.constant 0 : i32
    %c0_i32_1 = arith.constant 0 : i32
    return %c0_i32, %c0_i32_0 : i32, i32
  }
  func.func @transform_3(%arg0: i32) -> (i32, i32) {
    %c0_i32 = arith.constant 0 : i32
    %c0_i32_0 = arith.constant 0 : i32
    return %arg0, %c0_i32 : i32, i32
  }
}

</mosaic_0001>

<bundles_post_ra>
// kernel: tpu_custom_call.1
= control target key start
LH: loop header
LB: loop body
LE: loop exit
PB: predicated region body
PF: predicated region fallthrough
CT: control target
= control target key end

     0   :  { %8 = vsyncpa [#allocation3], 0  ;;  %s287_s0 = inlined_call_operand.hbm [shape: f32[32,32], index: 0, kind: input, shape index: {}]   ;;  %s288_s1 = inlined_call_operand.vmem [shape: f32[1,32], index: 1, kind: input, shape index: {}]   ;;  %s289_s2 = inlined_call_operand.vmem [shape: f32[1,32], index: 2, kind: input, shape index: {}]   ;;  %s290_s3 = inlined_call_operand.hbm [shape: bf16[32,32], index: 3, kind: output, shape index: {}]  }
   0x1   :  { %9 = vsyncpa [#allocation4], 0  ;;  %s219_s12 = smov [#allocation2]   ;;  %s171_s16 = scalar_lea.hbm %s287_s0, 512 }
   0x2   :  { %s15_s13 = sshll.u32 %s219_s12, 4  ;;  %p172_p0 = scmp.ne.s32.totalorder %s287_s0, %s171_s16  ;;  %s16_s13 = int_to_ptr.vmem [resolvable:$true] %s15_s13 }
   0x3   :  { %p175_p1 = scmp.lt.u32.totalorder %s171_s16, %s287_s0 }
   0x5   :  { %p177_p2 = pnand %p175_p1, %p172_p0 }
   0x7   :  { %180 = shalt.err (!%p177_p2)
}
   0x8   :  { %s181_s21 = scalar_lea.vmem %s16_s13, 512  ;;  %p186_p4 = scmp.lt.s32.totalorder %s16_s13, %s16_s13 }
   0x9   :  { %p182_p3 = scmp.ne.s32.totalorder %s16_s13, %s181_s21  ;;  %p187_p5 = scmp.lt.s32.totalorder %s181_s21, %s181_s21 }
   0xb   :  { %p188_p6 = por %p187_p5, %p186_p4 }
   0xd   :  { %p189_p7 = pnand %p188_p6, %p182_p3 }
   0xf   :  { %192 = shalt.err (!%p189_p7)
}
  0x10   :  { %s220_s22 = smov 128   ;;  %s221_s23 = smov 8  }
  0x11   :  { %21 = dma.hbm_to_vmem [thread:$0]  %s287_s0, 512, %s16_s13, [#allocation3], %s220_s22, %s220_s22, %s221_s23  }
  0x12   :  { %215 = dma.done.wait [#allocation3], 512  }
  0x13   :  { %216 = vsyncadd [#allocation3], 4294966784  ;;  %vm33_vm0 = vcmask 261120   ;;  %v29_v0 = vld [vmem:[#allocation2] sm:$0xff]  ;;  %v31_v1 = vld [vmem:[#allocation2 + $0x10] sm:$0xff]  ;;  %vm125_vm1 = vcmask 257024  }
  0x14   :  { %v30_v2 = vld [vmem:[#allocation2 + $0x8] sm:$0xff]  ;;  %v34_v3 = vsel %vm33_vm0, %v29_v0, 0.0  ;;  %v40_v4 = vsel %vm33_vm0, %v31_v1, 0.0  ;;  %v32_v5 = vld [vmem:[#allocation2 + $0x18] sm:$0xff]  ;;  %v147_v41 = vld [vmem:[%s288_s1] ss:$0 sm:$0xff] }
  0x15   :  { %35 = vadd.xlane.f32.xlu0 %v34_v3  ;;  %41 = vadd.xlane.f32.xlu1 %v40_v4  ;;  %v37_v6 = vsel %vm33_vm0, %v30_v2, 0.0  ;;  %v43_v7 = vsel %vm33_vm0, %v32_v5, 0.0  ;;  %v148_v43 = vld [vmem:[%s289_s2] ss:$0 sm:$0xff]  ;;  %s222_s1 = smov [#allocation5]  }
  0x16   :  { %s135_s2 = sshll.u32 %s222_s1, 4  ;;  %s136_s2 = int_to_ptr.vmem [resolvable:$true] %s135_s2 }
  0x17   :  { %s193_s29 = scalar_lea.vmem %s136_s2, 256  ;;  %p198_p9 = scmp.lt.s32.totalorder %s136_s2, %s136_s2 }
  0x18   :  { %p194_p8 = scmp.ne.s32.totalorder %s136_s2, %s193_s29  ;;  %p199_p10 = scmp.lt.s32.totalorder %s193_s29, %s193_s29 }
  0x19   :  { %38 = vadd.xlane.f32.xlu0 %v37_v6  ;;  %44 = vadd.xlane.f32.xlu1 %v43_v7 }
  0x1a   :  { %p200_p11 = por %p199_p10, %p198_p9 }
  0x1c   :  { %p201_p12 = pnand %p200_p11, %p194_p8 }
  0xa2   :  { %v36_v8 = vpop.xlane.xlu0 %35  ;;  %v42_v9 = vpop.xlane.xlu1 %41 }
  0xa3   :  { %v47_v10 = vmul.f32 0.03125, %v36_v8  ;;  %v49_v11 = vmul.f32 0.03125, %v42_v9 }
  0xa5   :  { %v51_v12 = vsub.f32 %v29_v0, %v47_v10  ;;  %v53_v13 = vsub.f32 %v31_v1, %v49_v11 }
  0xa6   :  { %v39_v14 = vpop.xlane.xlu0 %38  ;;  %v45_v15 = vpop.xlane.xlu1 %44 }
  0xa7   :  { %v48_v16 = vmul.f32 0.03125, %v39_v14  ;;  %v50_v17 = vmul.f32 0.03125, %v45_v15  ;;  %v55_v18 = vmul.f32 %v51_v12, %v51_v12  ;;  %v57_v19 = vmul.f32 %v53_v13, %v53_v13 }
  0xa9   :  { %v52_v20 = vsub.f32 %v30_v2, %v48_v16  ;;  %v54_v21 = vsub.f32 %v32_v5, %v50_v17  ;;  %v59_v22 = vsel %vm33_vm0, %v55_v18, 0.0  ;;  %v65_v23 = vsel %vm33_vm0, %v57_v19, 0.0 }
  0xaa   :  { %60 = vadd.xlane.f32.xlu0 %v59_v22 }
  0xab   :  { %v56_v24 = vmul.f32 %v52_v20, %v52_v20  ;;  %v58_v25 = vmul.f32 %v54_v21, %v54_v21 }
  0xad   :  { %v62_v26 = vsel %vm33_vm0, %v56_v24, 0.0  ;;  %v68_v27 = vsel %vm33_vm0, %v58_v25, 0.0 }
  0xae   :  { %66 = vadd.xlane.f32.xlu0 %v65_v23  ;;  %63 = vadd.xlane.f32.xlu1 %v62_v26 }
  0xb2   :  { %69 = vadd.xlane.f32.xlu1 %v68_v27 }
 0x137   :  { %v61_v28 = vpop.xlane.xlu0 %60 }
 0x138   :  { %v71_v29 = vmul.f32 0.03125, %v61_v28 }
 0x13a   :  { %v75_v30 = vadd.f32 1e-12, %v71_v29 }
 0x13b   :  { %v64_v31 = vpop.xlane.xlu1 %63  ;;  %v67_v32 = vpop.xlane.xlu0 %66 }
 0x13c   :  { %163 = vrsqrt.f32 %v75_v30  ;;  %v72_v33 = vmul.f32 0.03125, %v64_v31  ;;  %v73_v34 = vmul.f32 0.03125, %v67_v32 }
 0x13e   :  { %v76_v35 = vadd.f32 1e-12, %v72_v33  ;;  %v77_v36 = vadd.f32 1e-12, %v73_v34 }
 0x13f   :  { %v70_v37 = vpop.xlane.xlu1 %69 }
 0x140   :  { %165 = vrsqrt.f32 %v76_v35  ;;  %v74_v38 = vmul.f32 0.03125, %v70_v37 }
 0x141   :  { %167 = vrsqrt.f32 %v77_v36 }
 0x142   :  { %v78_v39 = vadd.f32 1e-12, %v74_v38 }
 0x144   :  { %169 = vrsqrt.f32 %v78_v39 }
 0x146   :  { %v164_v40 = vpop.eup %163 }
 0x147   :  { %v83_v42 = vmul.f32 %v164_v40, %v51_v12 }
 0x149   :  { %v94_v44 = vmul.f32 %v147_v41, %v83_v42 }
 0x14a   :  { %v166_v45 = vpop.eup %165 }
 0x14b   :  { %v168_v46 = vpop.eup %167  ;;  %v105_v47 = vadd.f32 %v148_v43, %v94_v44  ;;  %v84_v48 = vmul.f32 %v166_v45, %v52_v20 }
 0x14c   :  { %v85_v49 = vmul.f32 %v168_v46, %v53_v13 }
 0x14d   :  { %v153_v50 = vpack.c.bf16 %v105_v47, %v105_v47  ;;  %v95_v51 = vmul.f32 %v147_v41, %v84_v48 }
 0x14e   :  { %v170_v52 = vpop.eup %169  ;;  %v96_v53 = vmul.f32 %v147_v41, %v85_v49 }
 0x14f   :  { %v106_v54 = vadd.f32 %v148_v43, %v95_v51  ;;  %v86_v55 = vmul.f32 %v170_v52, %v54_v21  ;;  %126 = vst.msk [vmem:[#allocation5] sm:$0xf] %vm125_vm1, %v153_v50 }
 0x150   :  { %v107_v56 = vadd.f32 %v148_v43, %v96_v53 }
 0x151   :  { %v154_v57 = vpack.c.bf16 %v106_v54, %v106_v54  ;;  %v97_v58 = vmul.f32 %v147_v41, %v86_v55 }
 0x152   :  { %v155_v59 = vpack.c.bf16 %v107_v56, %v107_v56 }
 0x153   :  { %v108_v60 = vadd.f32 %v148_v43, %v97_v58  ;;  %127 = vst.msk [vmem:[#allocation5 + $0x4] sm:$0xf] %vm125_vm1, %v154_v57 }
 0x154   :  { %128 = vst.msk [vmem:[#allocation5 + $0x8] sm:$0xf] %vm125_vm1, %v155_v59 }
 0x155   :  { %v156_v61 = vpack.c.bf16 %v108_v60, %v108_v60 }
 0x157   :  { %129 = vst.msk [vmem:[#allocation5 + $0xc] sm:$0xf] %vm125_vm1, %v156_v61 }
 0x158   :  { %204 = shalt.err (!%p201_p12)
}
 0x159   :  { %s205_s5 = scalar_lea.hbm %s290_s3, 256 }
 0x15a   :  { %p206_p13 = scmp.ne.s32.totalorder %s290_s3, %s205_s5  ;;  %p209_p0 = scmp.lt.u32.totalorder %s205_s5, %s290_s3 }
 0x15c   :  { %p211_p1 = pnand %p209_p0, %p206_p13 }
 0x15e   :  { %214 = shalt.err (!%p211_p1)
}
 0x15f   :  { %s223_s10 = smov 64   ;;  %s224_s11 = smov 4  }
 0x160   :  { %141 = dma.vmem_to_hbm [thread:$0]  %s136_s2, 256, %s290_s3, [#allocation4], %s223_s10, %s223_s10, %s224_s11  }
 0x161   :  { %217 = dma.done.wait [#allocation4], 256  }
 0x162   :  { %218 = vsyncadd [#allocation4], 4294967040 }
 0x163   :  { %145 = vsyncpa [#allocation3], 1 }
 0x164   :  { %146 = vsyncpa [#allocation4], 1 }

</bundles_post_ra>
